<compile_context>
chip_gen: v6e
topology: v6e:2x2x1
jax: 0.10.0
libtpu: 0.0.40
codegen_flags: <defaults>
</compile_context>

<pallas_src>
import functools

import jax
import jax.numpy as jnp
from jax import lax
from jax.experimental import pallas as pl
from jax.experimental.pallas import tpu as pltpu


def mha_kernel(x_ref, wqkv_ref, bqkv_ref, wproj_ref, bproj_ref, out_ref,
               *, num_heads, emb_size):
    """One batch element per grid step.

    x_ref    : (1, N, E)
    wqkv_ref : (E, 3E)   columns ordered [Q(h,d) | K(h,d) | V(h,d)]
    bqkv_ref : (1, 3E)
    wproj_ref: (E, E)
    bproj_ref: (1, E)
    out_ref  : (1, N, E)
    """
    e = emb_size
    h = num_heads
    d = e // h

    x = x_ref[0]                                                   # (N, E)

    # QKV projection: one dense MXU matmul for all heads / q,k,v at once.
    qkv = jnp.dot(x, wqkv_ref[...], preferred_element_type=jnp.float32)
    qkv = qkv + bqkv_ref[...]                                      # (N, 3E)

    inv_scale = 1.0 / (float(e) ** 0.5)                            # softmax / sqrt(E)

    head_outs = []
    for hi in range(h):                                            # static unroll, h is small
        q = qkv[:, hi * d:(hi + 1) * d]                            # (N, d)
        k = qkv[:, e + hi * d:e + (hi + 1) * d]                    # (N, d)
        v = qkv[:, 2 * e + hi * d:2 * e + (hi + 1) * d]            # (N, d)

        # energy = q @ k^T, contracted on the head dim (no explicit transpose).
        energy = lax.dot_general(q, k, (((1,), (1,)), ((), ())),
                                 preferred_element_type=jnp.float32)  # (N, N)

        # softmax(energy) / sqrt(E)   (scaling AFTER softmax, as in the torch code)
        m = jnp.max(energy, axis=-1, keepdims=True)
        p = jnp.exp(energy - m)
        att = (p / jnp.sum(p, axis=-1, keepdims=True)) * inv_scale    # (N, N)

        head_outs.append(jnp.dot(att, v, preferred_element_type=jnp.float32))

    ctx = jnp.concatenate(head_outs, axis=-1)                      # (N, E) == 'b n (h d)'

    out = jnp.dot(ctx, wproj_ref[...], preferred_element_type=jnp.float32)
    out = out + bproj_ref[...]                                     # (N, E)
    out_ref[0] = out.astype(out_ref.dtype)


def multi_head_attention(x, params, *, num_heads):
    """x: (B, N, E) float32. params use torch nn.Linear conventions."""
    b, n, e = x.shape
    assert e % num_heads == 0
    d = e // num_heads

    # Fold the 'b n (h d qkv) -> qkv b h n d' rearrange into a permutation of the
    # QKV Linear's output columns (= weight rows):  old = h*d*3 + dd*3 + qkv
    # maps to new = qkv*E + h*d + dd, so Q / K / V come out as contiguous blocks.
    perm = jnp.arange(3 * e).reshape(num_heads, d, 3).transpose(2, 0, 1).reshape(-1)
    w_qkv = params['w_qkv'][perm, :].T                 # (E, 3E)
    b_qkv = params['b_qkv'][perm].reshape(1, 3 * e)    # (1, 3E)
    w_proj = params['w_proj'].T                        # (E, E)
    b_proj = params['b_proj'].reshape(1, e)            # (1, E)

    kernel = functools.partial(mha_kernel, num_heads=num_heads, emb_size=e)

    flops = b * (2 * n * e * 3 * e          # QKV projection
                 + 4 * n * n * e            # energy + att@v over all heads
                 + 2 * n * e * e)           # output projection
    transcendentals = b * num_heads * n * n  # exp in softmax
    bytes_accessed = 4 * (2 * b * n * e + e * 3 * e + 3 * e + e * e + e)

    return pl.pallas_call(
        kernel,
        out_shape=jax.ShapeDtypeStruct((b, n, e), jnp.float32),
        grid=(b,),
        in_specs=[
            pl.BlockSpec((1, n, e), lambda i: (i, 0, 0)),        # x: one batch per step
            pl.BlockSpec((e, 3 * e), lambda i: (0, 0)),          # W_qkv (resident)
            pl.BlockSpec((1, 3 * e), lambda i: (0, 0)),          # b_qkv
            pl.BlockSpec((e, e), lambda i: (0, 0)),              # W_proj
            pl.BlockSpec((1, e), lambda i: (0, 0)),              # b_proj
        ],
        out_specs=pl.BlockSpec((1, n, e), lambda i: (i, 0, 0)),
        compiler_params=pltpu.CompilerParams(
            dimension_semantics=("parallel",),                   # batch shards across TCs (v7x)
            vmem_limit_bytes=64 * 1024 * 1024),
        cost_estimate=pl.CostEstimate(flops=flops,
                                      transcendentals=transcendentals,
                                      bytes_accessed=bytes_accessed),
    )(x, w_qkv, b_qkv, w_proj, b_proj)


def reference(x, params, num_heads):
    """Pure-JAX mirror of the PyTorch forward (including the (h d qkv) interleave
    and the softmax-then-scale order)."""
    b, n, e = x.shape
    d = e // num_heads
    qkv_lin = x @ params['w_qkv'].T + params['b_qkv']              # (B, N, 3E)
    qkv = qkv_lin.reshape(b, n, num_heads, d, 3).transpose(4, 0, 2, 1, 3)  # (3, B, H, N, d)
    q, k, v = qkv[0], qkv[1], qkv[2]
    energy = jnp.einsum('bhqd,bhkd->bhqk', q, k)
    att = jax.nn.softmax(energy, axis=-1) / (e ** 0.5)
    out = jnp.einsum('bhal,bhlv->bhav', att, v)                    # (B, H, N, d)
    out = out.transpose(0, 2, 1, 3).reshape(b, n, e)               # 'b h n d -> b n (h d)'
    return out @ params['w_proj'].T + params['b_proj']


if __name__ == "__main__":
    # Small config consistent with the module (emb_size divisible by num_heads).
    B, N, E, H = 2, 8, 32, 4

    key = jax.random.PRNGKey(0)
    ks = jax.random.split(key, 5)
    params = {
        'w_qkv': jax.random.normal(ks[0], (3 * E, E), jnp.float32) * 0.1,
        'b_qkv': jax.random.normal(ks[1], (3 * E,), jnp.float32) * 0.1,
        'w_proj': jax.random.normal(ks[2], (E, E), jnp.float32) * 0.1,
        'b_proj': jax.random.normal(ks[3], (E,), jnp.float32) * 0.1,
    }
    x = jax.random.normal(ks[4], (B, N, E), jnp.float32)

    out = multi_head_attention(x, params, num_heads=H)
    out = jax.block_until_ready(out)

    ref = reference(x, params, H)
    assert out.shape == (B, N, E), out.shape
    if not jnp.allclose(out, ref, atol=2e-5, rtol=2e-5):
        raise AssertionError("Pallas MultiHeadAttention does not match reference")
    print("KERNEL_OK")
</pallas_src>

<mosaic_0001>
module attributes {stable_mosaic.version = 11 : i64} {
  func.func @mha_kernel(%arg0: i32, %arg1: memref<1x8x32xf32, #tpu.memory_space<vmem>>, %arg2: memref<32x96xf32, #tpu.memory_space<vmem>>, %arg3: memref<1x96xf32, #tpu.memory_space<vmem>>, %arg4: memref<32x32xf32, #tpu.memory_space<vmem>>, %arg5: memref<1x32xf32, #tpu.memory_space<vmem>>, %arg6: memref<1x8x32xf32, #tpu.memory_space<vmem>>) attributes {dimension_semantics = [#tpu.dimension_semantics<parallel>], iteration_bounds = array<i64: 2>, scalar_prefetch = 0 : i64, scratch_operands = 0 : i64, tpu.core_type = #tpu.core_type<tc>, window_params = [{transform_indices = @transform_0, window_bounds = array<i64: 1, 8, 32>}, {pipeline_mode = #tpu.pipeline_mode<synchronous>, transform_indices = @transform_1, window_bounds = array<i64: 32, 96>}, {pipeline_mode = #tpu.pipeline_mode<synchronous>, transform_indices = @transform_2, window_bounds = array<i64: 1, 96>}, {pipeline_mode = #tpu.pipeline_mode<synchronous>, transform_indices = @transform_3, window_bounds = array<i64: 32, 32>}, {pipeline_mode = #tpu.pipeline_mode<synchronous>, transform_indices = @transform_4, window_bounds = array<i64: 1, 32>}, {transform_indices = @transform_5, window_bounds = array<i64: 1, 8, 32>}]} {
    %c0 = arith.constant 0 : index
    %c0_0 = arith.constant 0 : index
    %c0_1 = arith.constant 0 : index
    %0 = vector.load %arg1[%c0, %c0_0, %c0_1] : memref<1x8x32xf32, #tpu.memory_space<vmem>>, vector<1x8x32xf32>
    %1 = vector.shape_cast %0 : vector<1x8x32xf32> to vector<8x32xf32>
    %c0_2 = arith.constant 0 : index
    %c0_3 = arith.constant 0 : index
    %2 = vector.load %arg2[%c0_2, %c0_3] : memref<32x96xf32, #tpu.memory_space<vmem>>, vector<32x96xf32>
    %cst = arith.constant dense<0.000000e+00> : vector<8x96xf32>
    %3 = tpu.matmul %1, %2, %cst {dimension_numbers = #tpu.dot_dimension_numbers<[1], [0], [0], [1], [0, 0, 1, 1], [], []>} : vector<8x32xf32>, vector<32x96xf32>, vector<8x96xf32> -> vector<8x96xf32>
    %c0_4 = arith.constant 0 : index
    %c0_5 = arith.constant 0 : index
    %4 = vector.load %arg3[%c0_4, %c0_5] : memref<1x96xf32, #tpu.memory_space<vmem>>, vector<1x96xf32>
    %5 = vector.broadcast %4 : vector<1x96xf32> to vector<8x96xf32>
    %6 = arith.addf %3, %5 : vector<8x96xf32>
    %7 = vector.extract_strided_slice %6 {offsets = [0, 0], sizes = [8, 8], strides = [1, 1]} : vector<8x96xf32> to vector<8x8xf32>
    %8 = vector.extract_strided_slice %6 {offsets = [0, 32], sizes = [8, 8], strides = [1, 1]} : vector<8x96xf32> to vector<8x8xf32>
    %9 = vector.extract_strided_slice %6 {offsets = [0, 64], sizes = [8, 8], strides = [1, 1]} : vector<8x96xf32> to vector<8x8xf32>
    %cst_6 = arith.constant dense<0.000000e+00> : vector<8x8xf32>
    %10 = tpu.matmul %7, %8, %cst_6 {dimension_numbers = #tpu.dot_dimension_numbers<[1], [1], [0], [0], [0, 0, 1, 0], [], []>} : vector<8x8xf32>, vector<8x8xf32>, vector<8x8xf32> -> vector<8x8xf32>
    %cst_7 = arith.constant dense<0xFF800000> : vector<8xf32>
    %11 = vector.multi_reduction <maximumf>, %10, %cst_7 [1] : vector<8x8xf32> to vector<8xf32>
    %12 = vector.shape_cast %11 : vector<8xf32> to vector<8x1xf32>
    %13 = vector.broadcast %12 : vector<8x1xf32> to vector<8x8xf32>
    %14 = arith.subf %10, %13 : vector<8x8xf32>
    %15 = math.exp %14 : vector<8x8xf32>
    %cst_8 = arith.constant dense<0.000000e+00> : vector<8xf32>
    %16 = vector.multi_reduction <add>, %15, %cst_8 [1] : vector<8x8xf32> to vector<8xf32>
    %17 = vector.shape_cast %16 : vector<8xf32> to vector<8x1xf32>
    %18 = vector.broadcast %17 : vector<8x1xf32> to vector<8x8xf32>
    %19 = arith.divf %15, %18 : vector<8x8xf32>
    %cst_9 = arith.constant 0.176776692 : f32
    %20 = vector.broadcast %cst_9 : f32 to vector<8x8xf32>
    %21 = arith.mulf %19, %20 : vector<8x8xf32>
    %cst_10 = arith.constant dense<0.000000e+00> : vector<8x8xf32>
    %22 = tpu.matmul %21, %9, %cst_10 {dimension_numbers = #tpu.dot_dimension_numbers<[1], [0], [0], [1], [0, 0, 1, 1], [], []>} : vector<8x8xf32>, vector<8x8xf32>, vector<8x8xf32> -> vector<8x8xf32>
    %23 = vector.extract_strided_slice %6 {offsets = [0, 8], sizes = [8, 8], strides = [1, 1]} : vector<8x96xf32> to vector<8x8xf32>
    %24 = vector.extract_strided_slice %6 {offsets = [0, 40], sizes = [8, 8], strides = [1, 1]} : vector<8x96xf32> to vector<8x8xf32>
    %25 = vector.extract_strided_slice %6 {offsets = [0, 72], sizes = [8, 8], strides = [1, 1]} : vector<8x96xf32> to vector<8x8xf32>
    %cst_11 = arith.constant dense<0.000000e+00> : vector<8x8xf32>
    %26 = tpu.matmul %23, %24, %cst_11 {dimension_numbers = #tpu.dot_dimension_numbers<[1], [1], [0], [0], [0, 0, 1, 0], [], []>} : vector<8x8xf32>, vector<8x8xf32>, vector<8x8xf32> -> vector<8x8xf32>
    %cst_12 = arith.constant dense<0xFF800000> : vector<8xf32>
    %27 = vector.multi_reduction <maximumf>, %26, %cst_12 [1] : vector<8x8xf32> to vector<8xf32>
    %28 = vector.shape_cast %27 : vector<8xf32> to vector<8x1xf32>
    %29 = vector.broadcast %28 : vector<8x1xf32> to vector<8x8xf32>
    %30 = arith.subf %26, %29 : vector<8x8xf32>
    %31 = math.exp %30 : vector<8x8xf32>
    %cst_13 = arith.constant dense<0.000000e+00> : vector<8xf32>
    %32 = vector.multi_reduction <add>, %31, %cst_13 [1] : vector<8x8xf32> to vector<8xf32>
    %33 = vector.shape_cast %32 : vector<8xf32> to vector<8x1xf32>
    %34 = vector.broadcast %33 : vector<8x1xf32> to vector<8x8xf32>
    %35 = arith.divf %31, %34 : vector<8x8xf32>
    %cst_14 = arith.constant 0.176776692 : f32
    %36 = vector.broadcast %cst_14 : f32 to vector<8x8xf32>
    %37 = arith.mulf %35, %36 : vector<8x8xf32>
    %cst_15 = arith.constant dense<0.000000e+00> : vector<8x8xf32>
    %38 = tpu.matmul %37, %25, %cst_15 {dimension_numbers = #tpu.dot_dimension_numbers<[1], [0], [0], [1], [0, 0, 1, 1], [], []>} : vector<8x8xf32>, vector<8x8xf32>, vector<8x8xf32> -> vector<8x8xf32>
    %39 = vector.extract_strided_slice %6 {offsets = [0, 16], sizes = [8, 8], strides = [1, 1]} : vector<8x96xf32> to vector<8x8xf32>
    %40 = vector.extract_strided_slice %6 {offsets = [0, 48], sizes = [8, 8], strides = [1, 1]} : vector<8x96xf32> to vector<8x8xf32>
    %41 = vector.extract_strided_slice %6 {offsets = [0, 80], sizes = [8, 8], strides = [1, 1]} : vector<8x96xf32> to vector<8x8xf32>
    %cst_16 = arith.constant dense<0.000000e+00> : vector<8x8xf32>
    %42 = tpu.matmul %39, %40, %cst_16 {dimension_numbers = #tpu.dot_dimension_numbers<[1], [1], [0], [0], [0, 0, 1, 0], [], []>} : vector<8x8xf32>, vector<8x8xf32>, vector<8x8xf32> -> vector<8x8xf32>
    %cst_17 = arith.constant dense<0xFF800000> : vector<8xf32>
    %43 = vector.multi_reduction <maximumf>, %42, %cst_17 [1] : vector<8x8xf32> to vector<8xf32>
    %44 = vector.shape_cast %43 : vector<8xf32> to vector<8x1xf32>
    %45 = vector.broadcast %44 : vector<8x1xf32> to vector<8x8xf32>
    %46 = arith.subf %42, %45 : vector<8x8xf32>
    %47 = math.exp %46 : vector<8x8xf32>
    %cst_18 = arith.constant dense<0.000000e+00> : vector<8xf32>
    %48 = vector.multi_reduction <add>, %47, %cst_18 [1] : vector<8x8xf32> to vector<8xf32>
    %49 = vector.shape_cast %48 : vector<8xf32> to vector<8x1xf32>
    %50 = vector.broadcast %49 : vector<8x1xf32> to vector<8x8xf32>
    %51 = arith.divf %47, %50 : vector<8x8xf32>
    %cst_19 = arith.constant 0.176776692 : f32
    %52 = vector.broadcast %cst_19 : f32 to vector<8x8xf32>
    %53 = arith.mulf %51, %52 : vector<8x8xf32>
    %cst_20 = arith.constant dense<0.000000e+00> : vector<8x8xf32>
    %54 = tpu.matmul %53, %41, %cst_20 {dimension_numbers = #tpu.dot_dimension_numbers<[1], [0], [0], [1], [0, 0, 1, 1], [], []>} : vector<8x8xf32>, vector<8x8xf32>, vector<8x8xf32> -> vector<8x8xf32>
    %55 = vector.extract_strided_slice %6 {offsets = [0, 24], sizes = [8, 8], strides = [1, 1]} : vector<8x96xf32> to vector<8x8xf32>
    %56 = vector.extract_strided_slice %6 {offsets = [0, 56], sizes = [8, 8], strides = [1, 1]} : vector<8x96xf32> to vector<8x8xf32>
    %57 = vector.extract_strided_slice %6 {offsets = [0, 88], sizes = [8, 8], strides = [1, 1]} : vector<8x96xf32> to vector<8x8xf32>
    %cst_21 = arith.constant dense<0.000000e+00> : vector<8x8xf32>
    %58 = tpu.matmul %55, %56, %cst_21 {dimension_numbers = #tpu.dot_dimension_numbers<[1], [1], [0], [0], [0, 0, 1, 0], [], []>} : vector<8x8xf32>, vector<8x8xf32>, vector<8x8xf32> -> vector<8x8xf32>
    %cst_22 = arith.constant dense<0xFF800000> : vector<8xf32>
    %59 = vector.multi_reduction <maximumf>, %58, %cst_22 [1] : vector<8x8xf32> to vector<8xf32>
    %60 = vector.shape_cast %59 : vector<8xf32> to vector<8x1xf32>
    %61 = vector.broadcast %60 : vector<8x1xf32> to vector<8x8xf32>
    %62 = arith.subf %58, %61 : vector<8x8xf32>
    %63 = math.exp %62 : vector<8x8xf32>
    %cst_23 = arith.constant dense<0.000000e+00> : vector<8xf32>
    %64 = vector.multi_reduction <add>, %63, %cst_23 [1] : vector<8x8xf32> to vector<8xf32>
    %65 = vector.shape_cast %64 : vector<8xf32> to vector<8x1xf32>
    %66 = vector.broadcast %65 : vector<8x1xf32> to vector<8x8xf32>
    %67 = arith.divf %63, %66 : vector<8x8xf32>
    %cst_24 = arith.constant 0.176776692 : f32
    %68 = vector.broadcast %cst_24 : f32 to vector<8x8xf32>
    %69 = arith.mulf %67, %68 : vector<8x8xf32>
    %cst_25 = arith.constant dense<0.000000e+00> : vector<8x8xf32>
    %70 = tpu.matmul %69, %57, %cst_25 {dimension_numbers = #tpu.dot_dimension_numbers<[1], [0], [0], [1], [0, 0, 1, 1], [], []>} : vector<8x8xf32>, vector<8x8xf32>, vector<8x8xf32> -> vector<8x8xf32>
    %71 = tpu.concatenate %22, %38, %54, %70 in 1 : vector<8x8xf32>, vector<8x8xf32>, vector<8x8xf32>, vector<8x8xf32> -> vector<8x32xf32>
    %c0_26 = arith.constant 0 : index
    %c0_27 = arith.constant 0 : index
    %72 = vector.load %arg4[%c0_26, %c0_27] : memref<32x32xf32, #tpu.memory_space<vmem>>, vector<32x32xf32>
    %cst_28 = arith.constant dense<0.000000e+00> : vector<8x32xf32>
    %73 = tpu.matmul %71, %72, %cst_28 {dimension_numbers = #tpu.dot_dimension_numbers<[1], [0], [0], [1], [0, 0, 1, 1], [], []>} : vector<8x32xf32>, vector<32x32xf32>, vector<8x32xf32> -> vector<8x32xf32>
    %c0_29 = arith.constant 0 : index
    %c0_30 = arith.constant 0 : index
    %74 = vector.load %arg5[%c0_29, %c0_30] : memref<1x32xf32, #tpu.memory_space<vmem>>, vector<1x32xf32>
    %75 = vector.broadcast %74 : vector<1x32xf32> to vector<8x32xf32>
    %76 = arith.addf %73, %75 : vector<8x32xf32>
    %c0_31 = arith.constant 0 : index
    %c0_32 = arith.constant 0 : index
    %c0_33 = arith.constant 0 : index
    %77 = vector.load %arg6[%c0_31, %c0_32, %c0_33] : memref<1x8x32xf32, #tpu.memory_space<vmem>>, vector<1x8x32xf32>
    %78 = vector.shape_cast %77 : vector<1x8x32xf32> to vector<8x32xf32>
    %79 = vector.shape_cast %76 : vector<8x32xf32> to vector<1x8x32xf32>
    tpu.vector_store %arg6[%c0_31, %c0_32, %c0_33], %79 {strides = array<i32>} : memref<1x8x32xf32, #tpu.memory_space<vmem>>, vector<1x8x32xf32>,
    return
  }
  func.func @transform_0(%arg0: i32) -> (i32, i32, i32) {
    %c0_i32 = arith.constant 0 : i32
    %c0_i32_0 = arith.constant 0 : i32
    %c0_i32_1 = arith.constant 0 : i32
    return %arg0, %c0_i32, %c0_i32_0 : i32, i32, i32
  }
  func.func @transform_1(%arg0: i32) -> (i32, i32) {
    %c0_i32 = arith.constant 0 : i32
    %c0_i32_0 = arith.constant 0 : i32
    %c0_i32_1 = arith.constant 0 : i32
    return %c0_i32, %c0_i32_0 : i32, i32
  }
  func.func @transform_2(%arg0: i32) -> (i32, i32) {
    %c0_i32 = arith.constant 0 : i32
    %c0_i32_0 = arith.constant 0 : i32
    %c0_i32_1 = arith.constant 0 : i32
    return %c0_i32, %c0_i32_0 : i32, i32
  }
  func.func @transform_3(%arg0: i32) -> (i32, i32) {
    %c0_i32 = arith.constant 0 : i32
    %c0_i32_0 = arith.constant 0 : i32
    %c0_i32_1 = arith.constant 0 : i32
    return %c0_i32, %c0_i32_0 : i32, i32
  }
  func.func @transform_4(%arg0: i32) -> (i32, i32) {
    %c0_i32 = arith.constant 0 : i32
    %c0_i32_0 = arith.constant 0 : i32
    %c0_i32_1 = arith.constant 0 : i32
    return %c0_i32, %c0_i32_0 : i32, i32
  }
  func.func @transform_5(%arg0: i32) -> (i32, i32, i32) {
    %c0_i32 = arith.constant 0 : i32
    %c0_i32_0 = arith.constant 0 : i32
    %c0_i32_1 = arith.constant 0 : i32
    return %arg0, %c0_i32, %c0_i32_0 : i32, i32, i32
  }
}

</mosaic_0001>

<bundles_post_ra>
// kernel: tpu_custom_call.1
= control target key start
LH: loop header
LB: loop body
LE: loop exit
PB: predicated region body
PF: predicated region fallthrough
CT: control target
= control target key end

     0   :  { %10 = vsyncpa [#allocation3], 0  ;;  %s1905_s0 = inlined_call_operand.hbm [shape: f32[2,8,32], index: 0, kind: input, shape index: {}]   ;;  %s1906_s1 = inlined_call_operand.hbm [shape: f32[32,96], index: 1, kind: input, shape index: {}]   ;;  %s1907_s2 = inlined_call_operand.vmem [shape: f32[1,96], index: 2, kind: input, shape index: {}]   ;;  %s1908_s3 = inlined_call_operand.hbm [shape: f32[32,32], index: 3, kind: input, shape index: {}]   ;;  %s1909_s4 = inlined_call_operand.vmem [shape: f32[1,32], index: 4, kind: input, shape index: {}]   ;;  %s1910_s5 = inlined_call_operand.hbm [shape: f32[2,8,32], index: 5, kind: output, shape index: {}]  }
   0x1   :  { %12 = vsyncpa [#allocation3 + $0x1], 0 }
   0x2   :  { %13 = vsyncpa [#allocation6], 0 }
   0x3   :  { %14 = vsyncpa [#allocation4], 0 }
   0x4   :  { %16 = vsyncpa [#allocation4 + $0x1], 0  ;;  %s1647_s18 = smov 0   ;;  %s1649_s19 = smov 0  }
   0x5   :  { %s1651_s20 = smov 0   ;;  %s1653_s21 = smov 0  }
   0x6 LB: > { %s1668_s22 = sadd.s32 4294967295, %s1593_s21   ;;  %s1224_s23 = sadd.s32 4294967294, %s1593_s21   ;;  %s1593_s21 = sphi %s1653_s21, %s1932_s21   ;;  %s1589_s20 = sphi %s1651_s20, %s1931_s20   ;;  %s1585_s19 = sphi %s1649_s19, %s1930_s19   ;;  %s1581_s18 = sphi %s1647_s18, %s1929_s18  }
   0x7   : > { %p42_p0 = scmp.ne.s32.totalorder %s1585_s19, %s1581_s18  ;;  %p1911_p1 = scmp.eq.s32.totalorder %s1668_s22, 0 }
   0x8   : > { %p156_p3 = scmp.eq.s32.totalorder %s1224_s23, 1  ;;  %p1225_p5 = scmp.ge.s32.totalorder %s1593_s21, 1 }
   0x9   : > { %p1677_p4 = por %p1911_p1, %p42_p0  ;;  %p163_p7 = scmp.lt.s32.totalorder %s1593_s21, 3 }
   0xa   : > { %p1682_p6 = por %p156_p3, %p42_p0  ;;  %s1595_s27 = smov [#allocation5]  }
   0xb   : > { %s1915_s24 = scalar_select %p1677_p4, 1, 0 }
   0xc   : > { %s1916_s25 = scalar_select %p1682_p6, 1, 0 }
   0xd   : > { %p1687_p8 = pnand %p1225_p5, %p163_p7  ;;  %s175_s28 = sshll.u32 %s1595_s27, 4  ;;  %s176_s28 = int_to_ptr.vmem [resolvable:$true] %s175_s28 }
   0xe   : > { %s1596_s30 = smov [#allocation7]   ;;  %s1456_s7 = scalar_lea.vmem %s176_s28, 512 }
   0xf   : > { %s1917_s26 = scalar_select %p1687_p8, 1, 0 }
  0x10   : > { %p1356_p9 = pneg %p1687_p8  ;;  %s191_s6 = sshll.u32 %s1596_s30, 4  ;;  %s192_s6 = int_to_ptr.vmem [resolvable:$true] %s191_s6 }
  0x11   : > { %p1457_p13 = scmp.ne.s32.totalorder %s176_s28, %s1456_s7  ;;  %p1464_p5 = scmp.lt.s32.totalorder %s176_s28, %s176_s28 }
  0x12   : > { %p1696_p11 = pnand %p1356_p9, %p1911_p1  ;;  %p1465_p7 = scmp.lt.s32.totalorder %s1456_s7, %s1456_s7 }
  0x14   : > { %p1447_p12 = pneg %p1696_p11  ;;  %p1466_p10 = por %p1465_p7, %p1464_p5 }
  0x16   : > { %p1459_p0 = pnand %p1457_p13, %p1447_p12 }
  0x18   : > { %p1460_p3 = pneg %p1459_p0 }
  0x1a   : > { %p1467_p9 = pnand %p1466_p10, %p1460_p3 }
  0x1c   : > { %1470 = shalt.err (!%p1467_p9)
}
  0x1d   : > { %s1597_s8 = smov 128   ;;  %s1598_s9 = smov 8  }
  0x1e   : > { %1359 = dma.hbm_to_vmem [thread:$0]  (!%p1696_p11), %s1906_s1, 512, %s176_s28, [#allocation6], %s1597_s8, %s1597_s8, %s1598_s9  }
  0x1f   : > { %s1482_s12 = scalar_lea.vmem %s192_s6, 512  ;;  %p1490_p2 = scmp.lt.s32.totalorder %s192_s6, %s192_s6 }
  0x20   : > { %p1483_p1 = scmp.ne.s32.totalorder %s192_s6, %s1482_s12  ;;  %p1491_p6 = scmp.lt.s32.totalorder %s1482_s12, %s1482_s12 }
  0x22   : > { %p1485_p13 = pnand %p1483_p1, %p1447_p12  ;;  %p1492_p5 = por %p1491_p6, %p1490_p2 }
  0x24   : > { %p1486_p0 = pneg %p1485_p13 }
  0x26   : > { %p1493_p10 = pnand %p1492_p5, %p1486_p0 }
  0x28   : > { %1496 = shalt.err (!%p1493_p10)
}
  0x29   : > { %1362 = dma.hbm_to_vmem [thread:$0]  (!%p1696_p11), %s1908_s3, 512, %s192_s6, [#allocation6], %s1597_s8, %s1597_s8, %s1598_s9  }
  0x2a   : > { %s1719_s15 = sadd.s32 1, %s1593_s21   ;;  %s29_s16 = sadd.s32 1, %s1589_s20 }
  0x2b   : > { %s26_s17 = ssub.s32 %s1593_s21, %s1719_s15  ;;  %p36_p1 = scmp.ne.s32.totalorder %s1589_s20, %s1585_s19 }
  0x2c   : > { %p27_p2 = scmp.eq.s32.totalorder %s26_s17, 0  ;;  %p37_p6 = scmp.eq.s32.totalorder %s1593_s21, 0 }
  0x2d   : > { %p1919_p12 = scmp.eq.s32.totalorder %s1668_s22, 1  ;;  %p1373_p7 = scmp.lt.s32.totalorder %s1593_s21, 2 }
  0x2e   : > { %s1735_s27 = scalar_select %p27_p2, %s1589_s20, %s29_s16  }
  0x2f   : > { %p1729_p3 = por %p1919_p12, %p36_p1  ;;  %p38_p9 = por %p37_p6, %p36_p1 }
  0x30   : > { %s208_s28 = sand.u32 1, %s1589_s20   ;;  %s1230_s30 = sshll.u32 %s1593_s21, 7 }
  0x31   : > { %s1920_s23 = scalar_select %p1729_p3, 1, 0 }
  0x32   : > { %s1229_s29 = sshll.u32 %s208_s28, 3  ;;  %s1742_s8 = scalar_lea.hbm %s1905_s0, %s1230_s30 }
  0x33   : > { %s212_s9 = scalar_lea.vmem [#allocation2], %s1229_s29  ;;  %p1744_p11 = pnand %p1373_p7, %p38_p9 }
  0x34   : > { %s219_s10 = sshll.u32 %s212_s9, 4  ;;  %s209_s12 = scalar_lea.sflag [#allocation3], %s208_s28  ;;  %s220_s10 = int_to_ptr.vmem [resolvable:$true] %s219_s10 }
  0x35   : > { %s1497_s13 = scalar_lea.hbm %s1742_s8, 128  ;;  %p1499_p0 = pneg %p1744_p11 }
  0x36   : > { %p1498_p13 = scmp.ne.s32.totalorder %s1742_s8, %s1497_s13  ;;  %s1502_s17 = scalar_lea.hbm %s1905_s0, 256 }
  0x37   : > { %p1503_p1 = scmp.lt.s32.totalorder %s1742_s8, %s1905_s0  ;;  %p1504_p2 = scmp.lt.s32.totalorder %s1502_s17, %s1497_s13 }
  0x38   : > { %p1500_p5 = pnand %p1499_p0, %p1498_p13 }
  0x39   : > { %p1505_p6 = por %p1504_p2, %p1503_p1 }
  0x3a   : > { %p1501_p10 = pneg %p1500_p5 }
  0x3c   : > { %p1506_p12 = pnand %p1505_p6, %p1501_p10 }
  0x3e   : > { %1509 = shalt.err (!%p1506_p12)
}
  0x3f   : > { %s1510_s6 = scalar_lea.vmem %s220_s10, 128  ;;  %s1599_s28 = smov [#allocation2]  }
  0x40   : > { %p1511_p7 = scmp.ne.s32.totalorder %s220_s10, %s1510_s6  ;;  %s1515_s7 = sshll.u32 %s1599_s28, 4  ;;  %s1516_s7 = int_to_ptr.vmem [resolvable:$false] %s1515_s7 }
  0x41   : > { %s1517_s9 = scalar_lea.vmem %s1516_s7, 256  ;;  %p1518_p13 = scmp.lt.s32.totalorder %s220_s10, %s1516_s7 }
  0x42   : > { %p1513_p9 = pnand %p1511_p7, %p1499_p0  ;;  %p1519_p5 = scmp.lt.s32.totalorder %s1517_s9, %s1510_s6 }
  0x44   : > { %p1514_p3 = pneg %p1513_p9  ;;  %p1520_p4 = por %p1519_p5, %p1518_p13 }
  0x46   : > { %p1521_p8 = pnand %p1520_p4, %p1514_p3 }
  0x48   : > { %1524 = shalt.err (!%p1521_p8)
}
  0x49   : > { %1366 = dma.hbm_to_vmem [thread:$0]  (!%p1744_p11), %s1742_s8, 128, %s220_s10, %s209_s12  }
  0x4a   : > { %p1922_p10 = scmp.ne.s32.totalorder %s1917_s26, 0 }
  0x4b   : > { %s1765_s13 = sand.u32 (!%p1922_p10), 1, %s1585_s19   ;;  %p1923_p4 = scmp.ne.s32.totalorder (!%p1922_p10), %s1915_s24, 0 }
  0x4c   : > { %228 = sbr.rel (%p1922_p10) target bundleno = 1951 (0x79f), region = 40  ;;  %s1232_s14 = sshll.u32 (!%p1922_p10), %s1765_s13, 3 }
  0x4d   : > { %s231_s16 = scalar_lea.sflag (!%p1922_p10), [#allocation3], %s1765_s13  ;;  %s234_s17 = scalar_lea.vmem (!%p1922_p10), [#allocation2], %s1232_s14 }
  0x51   : > { %1568 = dma.done.wait (%p1923_p4), %s231_s16, 128  }
  0x52   : > { %1570 = vsyncadd (%p1923_p4), %s231_s16, 4294967168  ;;  %p1924_p8 = scmp.eq.s32.totalorder %s1668_s22, 0 }
  0x54   : > { %1572 = dma.done.wait (%p1924_p8), [#allocation6], 1024   ;;  %p1925_p3 = pmov %p1924_p8 }
  0x55   : > { %v1600_v0 = vmov 0.0   ;;  %vm1601_vm0 = vmmov 0   ;;  %v273_v1 = vld [vmem:[#allocation5 + $0x18] sm:$0xff]  ;;  %v272_v2 = vld [vmem:[#allocation5 + $0x10] sm:$0xff]  ;;  %v271_v3 = vld [vmem:[#allocation5 + $0x8] sm:$0xff]  ;;  %vm281_vm1 = vcmask 261120  }
  0x56   : > { %1574 = vsyncadd (%p1925_p3), [#allocation6], 4294966272  ;;  %1282 = vmatprep.subr.mxu0 %v1600_v0  ;;  %1290 = vmatprep.mubr.msk.f32.mxu0 %vm1601_vm0, %v1600_v0  ;;  %v270_v4 = vld [vmem:[#allocation5] sm:$0xff]  ;;  %v269_v5 = vld [vmem:[%s234_s17] sm:$0xff]  ;;  %s1602_s8 = smov 64   ;;  %s1603_s10 = smov 96  }
  0x57   : > { %1293 = vmatprep.subr.mxu1 %v1600_v0  ;;  %1295 = vmatprep.mubr.msk.f32.mxu1 %vm1601_vm0, %v1600_v0  ;;  %v1236_v6 = vld [vmem:[%s1907_s2] ss:$0 sm:$0xff]  ;;  %s1604_s11 = smov 88   ;;  %s1605_s12 = smov 120   ;;  %vm358_vm2 = vcmask 64512   ;;  %vm1032_vm3 = vcmask 130048  }
  0x58   : > { %1283 = vmatpush3.msra.mxu0 %v273_v1  ;;  %s1606_s30 = smov 72   ;;  %s1607_s29 = smov 80   ;;  %vm1034_vm4 = vcmask 195584  }
  0x59   : > { %1284 = vmatprep.subr.mxu0 %v1600_v0  ;;  %s1608_s6 = smov 112   ;;  %s1609_s28 = smov 104  }
  0x5a   : > { %1285 = vmatpush3.msra.mxu0 %v272_v2  ;;  %s1610_s7 = smov 56   ;;  %s1611_s9 = smov 40  }
  0x5b   : > { %1286 = vmatprep.subr.mxu0 %v1600_v0  ;;  %s1612_s16 = smov 48   ;;  %s1613_s17 = smov 8  }
  0x5c   : > { %1287 = vmatpush3.msra.mxu0 %v271_v3  ;;  %s1614_s24 = smov 16   ;;  %s1615_s26 = smov 24  }
  0x5d   : > { %1288 = vmatprep.subr.mxu0 %v1600_v0  ;;  %p1926_p0 = scmp.ne.s32.totalorder %s1920_s23, 0 }
  0x5e   : > { %1289 = vmatpush3.msra.mxu0 %v270_v4 }
  0x5f   : > { %1291 = vmatmul.mubr.msk.f32.vlgmr.msra.gmra.mxu0 %vm281_vm1, %v269_v5  ;;  %1313 = vmatprep.subr.mxu0 %v1600_v0 }
  0x60   : > { %1315 = vmatprep.mubr.msk.f32.mxu0 %vm1601_vm0, %v1600_v0 }
 0x11f   : > { %v351_v7 = vpop.f32.mrf.mxu0 }
 0x120   : > { %v1795_v8 = vadd.f32 %v1236_v6, %v351_v7 }
 0x121   : > { %v1292_v9 = vpop.f32.mrf.mxu0 }
 0x122   : > { %445 = vrot.lane.b32.xlu1 %v1795_v8, %s1602_s8  ;;  %356 = vrot.lane.b32.xlu0 %v1795_v8, %s1603_s10  ;;  %v1038_v9 = vld [vmem:[#allocation7 + $0x10] sm:$0xff] }
 0x126   : > { %523 = vrot.lane.b32.xlu1 %v1795_v8, %s1604_s11  ;;  %s1253_s11 = sshll.u32 %s1668_s22, 7  ;;  %s1616_s22 = smov [#allocation8]  }
 0x12a   : > { %521 = vrot.lane.b32.xlu1 %v1795_v8, %s1605_s12  ;;  %s268_s12 = scalar_lea.vmem [#allocation8], %s1232_s14  ;;  %s1529_s14 = sshll.u32 %s1616_s22, 4  ;;  %s1530_s14 = int_to_ptr.vmem [resolvable:$false] %s1529_s14 }
 0x194   : > { %v357_v10 = vpop.permute.xlu0 %356  ;;  %v446_v11 = vpop.permute.xlu1 %445 }
 0x195   : > { %1294 = vmatpush3.xpose.msk.msra.mxu1 %vm358_vm2, %v357_v10  ;;  %v1037_v10 = vld [vmem:[#allocation7 + $0x8] sm:$0xff] }
 0x196   : > { %1298 = vmatprep.subr.mxu1 %v1600_v0 }
 0x198   : > { %1296 = vmatmul.mubr.msk.f32.vlgmr.msra.gmra.mxu1 %vm358_vm2, %v1795_v8  ;;  %v524_v20 = vpop.permute.xlu1 %523 }
 0x199   : > { %1299 = vmatpush3.msra.mxu1 %v446_v11  ;;  %1300 = vmatprep.mubr.msk.f32.mxu1 %vm1601_vm0, %v1600_v0  ;;  %v1036_v11 = vld [vmem:[#allocation7] sm:$0xff] }
 0x19a   : > { %1303 = vmatprep.subr.mxu1 %v1600_v0 }
 0x19c   : > { %v522_v21 = vpop.permute.xlu1 %521 }
 0x258   : > { %v429_v12 = vpop.f32.mrf.mxu1 }
 0x259   : > { %v433_v13 = vsel %vm358_vm2, %v429_v12, -inf }
 0x25a   : > { %434 = vmax.xlane.f32.xlu0 %v433_v13  ;;  %v1297_v14 = vpop.f32.mrf.mxu1 }
 0x270   : > { %855 = vrot.lane.b32.xlu0 %v1795_v8, %s1606_s30  ;;  %s1135_s30 = sshll.u32 %s268_s12, 4  ;;  %s1136_s30 = int_to_ptr.vmem [resolvable:$true] %s1135_s30 }
 0x271   : > { %p1532_p6 = scmp.lt.s32.totalorder %s1136_s30, %s1530_s14 }
 0x2e3   : > { %v435_v15 = vpop.xlane.xlu0 %434 }
 0x2e4   : > { %v436_v16 = vsub.f32 %v429_v12, %v435_v15 }
 0x2e6   : > { %v437_v17 = vmul.f32 1.442695, %v436_v16 }
 0x2e7   : > { %v856_v25 = vpop.permute.xlu0 %855 }
 0x2e8   : > { %1429 = vpow2.f32 %v437_v17 }
 0x2f5   : > { %v1430_v18 = vpop.eup %1429 }
 0x2f6   : > { %v439_v19 = vsel %vm358_vm2, %v1430_v18, 0.0 }
 0x2f7   : > { %440 = vadd.xlane.f32.xlu1 %v439_v19 }
 0x308   : > { %689 = vrot.lane.b32.xlu1 %v1795_v8, %s1607_s29 }
 0x30c   : > { %687 = vrot.lane.b32.xlu1 %v1795_v8, %s1608_s6 }
 0x310   : > { %853 = vrot.lane.b32.xlu1 %v1795_v8, %s1609_s28  ;;  %s1867_s28 = scalar_lea.hbm %s1910_s5, %s1253_s11 }
 0x380   : > { %v441_v22 = vpop.xlane.xlu1 %440 }
 0x381   : > { %1431 = vrcp.f32 %v441_v22 }
 0x384   : > { %v690_v23 = vpop.permute.xlu1 %689 }
 0x385   : > { %1314 = vmatpush3.xpose.msk.msra.mxu0 %vm358_vm2, %v690_v23  ;;  %v1250_v23 = vld [vmem:[%s1909_s4] ss:$0 sm:$0xff] }
 0x386   : > { %1323 = vmatprep.subr.mxu0 %v1600_v0 }
 0x388   : > { %v688_v24 = vpop.permute.xlu1 %687 }
 0x389   : > { %1316 = vmatmul.mubr.msk.f32.vlgmr.msra.gmra.mxu0 %vm358_vm2, %v688_v24 }
 0x38a   : > { %1324 = vmatpush3.xpose.msk.msra.mxu0 %vm358_vm2, %v856_v25  ;;  %1325 = vmatprep.mubr.msk.f32.mxu0 %vm1601_vm0, %v1600_v0 }
 0x38b   : > { %1333 = vmatprep.subr.mxu0 %v1600_v0 }
 0x38c   : > { %v854_v26 = vpop.permute.xlu1 %853 }
 0x38d   : > { %1326 = vmatmul.mubr.msk.f32.vlgmr.msra.gmra.mxu0 %vm358_vm2, %v854_v26 }
 0x38e   : > { %v1432_v27 = vpop.eup %1431  ;;  %1341 = vmatprep.mubr.msk.f32.mxu0 %vm1601_vm0, %v1600_v0 }
 0x38f   : > { %v443_v28 = vmul.f32 %v1432_v27, %v1430_v18 }
 0x391   : > { %v444_v29 = vmul.f32 0.17677669, %v443_v28 }
 0x393   : > { %1301 = vmatmul.mubr.msk.f32.vlgmr.msra.gmra.mxu1 %vm358_vm2, %v444_v29 }
 0x394   : > { %1304 = vmatpush3.xpose.msk.msra.mxu1 %vm358_vm2, %v524_v20  ;;  %1305 = vmatprep.mubr.msk.f32.mxu1 %vm1601_vm0, %v1600_v0 }
 0x395   : > { %1308 = vmatprep.subr.mxu1 %v1600_v0 }
 0x397   : > { %1306 = vmatmul.mubr.msk.f32.vlgmr.msra.gmra.mxu1 %vm358_vm2, %v522_v21 }
 0x398   : > { %1310 = vmatprep.mubr.msk.f32.mxu1 %vm1601_vm0, %v1600_v0 }
 0x449   : > { %v761_v30 = vpop.f32.mrf.mxu0 }
 0x44a   : > { %v765_v31 = vsel %vm358_vm2, %v761_v30, -inf }
 0x44b   : > { %766 = vmax.xlane.f32.xlu0 %v765_v31  ;;  %v1317_v32 = vpop.f32.mrf.mxu0 }
 0x44d   : > { %v927_v33 = vpop.f32.mrf.mxu0 }
 0x44e   : > { %v931_v40 = vsel %vm358_vm2, %v927_v33, -inf }
 0x44f   : > { %v1327_v34 = vpop.f32.mrf.mxu0 }
 0x453   : > { %v1833_v35 = vpop.f32.mrf.mxu1 }
 0x455   : > { %v1302_v36 = vpop.f32.mrf.mxu1 }
 0x457   : > { %v595_v37 = vpop.f32.mrf.mxu1 }
 0x458   : > { %v599_v38 = vsel %vm358_vm2, %v595_v37, -inf }
 0x459   : > { %600 = vmax.xlane.f32.xlu1 %v599_v38  ;;  %v1307_v39 = vpop.f32.mrf.mxu1 }
 0x45d   : > { %932 = vmax.xlane.f32.xlu1 %v931_v40 }
 0x4d4   : > { %v767_v41 = vpop.xlane.xlu0 %766 }
 0x4d5   : > { %v768_v42 = vsub.f32 %v761_v30, %v767_v41 }
 0x4d7   : > { %v769_v43 = vmul.f32 1.442695, %v768_v42 }
 0x4d9   : > { %1433 = vpow2.f32 %v769_v43 }
 0x4e2   : > { %v601_v44 = vpop.xlane.xlu1 %600 }
 0x4e3   : > { %v602_v45 = vsub.f32 %v595_v37, %v601_v44 }
 0x4e5   : > { %v603_v46 = vmul.f32 1.442695, %v602_v45 }
 0x4e6   : > { %v1434_v47 = vpop.eup %1433  ;;  %v933_v48 = vpop.xlane.xlu1 %932 }
 0x4e7   : > { %1435 = vpow2.f32 %v603_v46  ;;  %v934_v49 = vsub.f32 %v927_v33, %v933_v48  ;;  %v771_v50 = vsel %vm358_vm2, %v1434_v47, 0.0 }
 0x4e8   : > { %772 = vadd.xlane.f32.xlu1 %v771_v50 }
 0x4e9   : > { %v935_v51 = vmul.f32 1.442695, %v934_v49 }
 0x4eb   : > { %1437 = vpow2.f32 %v935_v51 }
 0x4f4   : > { %v1436_v52 = vpop.eup %1435 }
 0x4f5   : > { %v605_v53 = vsel %vm358_vm2, %v1436_v52, 0.0 }
 0x4f6   : > { %606 = vadd.xlane.f32.xlu1 %v605_v53 }
 0x4f8   : > { %v1438_v54 = vpop.eup %1437 }
 0x4f9   : > { %v937_v55 = vsel %vm358_vm2, %v1438_v54, 0.0 }
 0x4fa   : > { %938 = vadd.xlane.f32.xlu0 %v937_v55 }
 0x507   : > { %611 = vrot.lane.b32.xlu1 %v1795_v8, %s1610_s7  ;;  %s1122_s7 = scalar_lea.sflag [#allocation4], %s1765_s13 }
 0x50b   : > { %943 = vrot.lane.b32.xlu1 %v1795_v8, %s1611_s9  ;;  %s1525_s9 = scalar_lea.vmem %s1136_s30, 128 }
 0x50c   : > { %p1526_p11 = scmp.ne.s32.totalorder %s1136_s30, %s1525_s9 }
 0x50e   : > { %p1527_p1 = pnand %p1526_p11, %p1926_p0 }
 0x510   : > { %777 = vrot.lane.b32.xlu0 %v1795_v8, %s1612_s16  ;;  %v1039_v8 = vld [vmem:[#allocation7 + $0x18] sm:$0xff]  ;;  %p1528_p2 = pneg %p1527_p1  ;;  %s1531_s16 = scalar_lea.vmem %s1530_s14, 256 }
 0x511   : > { %1334 = vmatpush3.msra.mxu0 %v1039_v8  ;;  %p1533_p12 = scmp.lt.s32.totalorder %s1531_s16, %s1525_s9 }
 0x512   : > { %1335 = vmatprep.subr.mxu0 %v1600_v0 }
 0x513   : > { %1336 = vmatpush3.msra.mxu0 %v1038_v9  ;;  %p1534_p7 = por %p1533_p12, %p1532_p6 }
 0x514   : > { %1337 = vmatprep.subr.mxu0 %v1600_v0 }
 0x515   : > { %1338 = vmatpush3.msra.mxu0 %v1037_v10  ;;  %p1535_p9 = pnand %p1534_p7, %p1528_p2 }
 0x516   : > { %1339 = vmatprep.subr.mxu0 %v1600_v0 }
 0x517   : > { %1340 = vmatpush3.msra.mxu0 %v1036_v11 }
 0x571   : > { %v773_v56 = vpop.xlane.xlu1 %772 }
 0x572   : > { %1439 = vrcp.f32 %v773_v56 }
 0x57f   : > { %v607_v57 = vpop.xlane.xlu1 %606  ;;  %v1440_v60 = vpop.eup %1439 }
 0x580   : > { %1441 = vrcp.f32 %v607_v57  ;;  %v775_v1 = vmul.f32 %v1440_v60, %v1434_v47 }
 0x582   : > { %v776_v4 = vmul.f32 0.17677669, %v775_v1 }
 0x583   : > { %v939_v58 = vpop.xlane.xlu0 %938  ;;  %v612_v59 = vpop.permute.xlu1 %611 }
 0x584   : > { %1443 = vrcp.f32 %v939_v58  ;;  %1309 = vmatpush3.msra.mxu1 %v612_v59 }
 0x585   : > { %1318 = vmatprep.subr.mxu1 %v1600_v0 }
 0x587   : > { %v778_v3 = vpop.permute.xlu0 %777  ;;  %v944_v6 = vpop.permute.xlu1 %943 }
 0x58d   : > { %v1442_v61 = vpop.eup %1441 }
 0x58e   : > { %v609_v62 = vmul.f32 %v1442_v61, %v1436_v52 }
 0x590   : > { %v610_v63 = vmul.f32 0.17677669, %v609_v62 }
 0x591   : > { %v1444_v2 = vpop.eup %1443 }
 0x592   : > { %1311 = vmatmul.mubr.msk.f32.vlgmr.msra.gmra.mxu1 %vm358_vm2, %v610_v63  ;;  %v941_v5 = vmul.f32 %v1444_v2, %v1438_v54 }
 0x593   : > { %1319 = vmatpush3.msra.mxu1 %v778_v3  ;;  %1320 = vmatprep.mubr.msk.f32.mxu1 %vm1601_vm0, %v1600_v0 }
 0x594   : > { %1328 = vmatprep.subr.mxu1 %v1600_v0  ;;  %v942_v7 = vmul.f32 0.17677669, %v941_v5 }
 0x596   : > { %1321 = vmatmul.mubr.msk.f32.vlgmr.msra.gmra.mxu1 %vm358_vm2, %v776_v4 }
 0x597   : > { %1329 = vmatpush3.msra.mxu1 %v944_v6  ;;  %1330 = vmatprep.mubr.msk.f32.mxu1 %vm1601_vm0, %v1600_v0 }
 0x59a   : > { %1331 = vmatmul.mubr.msk.f32.vlgmr.msra.gmra.mxu1 %vm358_vm2, %v942_v7 }
 0x652   : > { %v683_v12 = vpop.f32.mrf.mxu1 }
 0x653   : > { %1020 = vrot.lane.b32.xlu1 %v683_v12, %s1613_s17 }
 0x654   : > { %v1312_v13 = vpop.f32.mrf.mxu1 }
 0x656   : > { %v849_v14 = vpop.f32.mrf.mxu1 }
 0x657   : > { %1024 = vrot.lane.b32.xlu0 %v849_v14, %s1614_s24 }
 0x658   : > { %v1322_v15 = vpop.f32.mrf.mxu1 }
 0x65a   : > { %v1015_v16 = vpop.f32.mrf.mxu1 }
 0x65b   : > { %1028 = vrot.lane.b32.xlu1 %v1015_v16, %s1615_s26 }
 0x65c   : > { %v1332_v17 = vpop.f32.mrf.mxu1 }
 0x6c5   : > { %v1021_v18 = vpop.permute.xlu1 %1020 }
 0x6c6   : > { %v1031_v0 = vsel %vm358_vm2, %v1833_v35, %v1021_v18 }
 0x6c9   : > { %v1025_v19 = vpop.permute.xlu0 %1024 }
 0x6ca   : > { %v1033_v20 = vsel %vm1032_vm3, %v1031_v0, %v1025_v19 }
 0x6cd   : > { %v1029_v21 = vpop.permute.xlu1 %1028 }
 0x6ce   : > { %v1035_v22 = vsel %vm1034_vm4, %v1033_v20, %v1029_v21 }
 0x6cf   : > { %1342 = vmatmul.mubr.msk.f32.vlgmr.msra.gmra.mxu0 %vm281_vm1, %v1035_v22 }
 0x78f   : > { %v1116_v24 = vpop.f32.mrf.mxu0 }
 0x790   : > { %v1117_v25 = vadd.f32 %v1250_v23, %v1116_v24 }
 0x791   : > { %v1343_v26 = vpop.f32.mrf.mxu0 }
 0x792   : > { %1120 = vst.msk [vmem:[%s268_s12] sm:$0xff] %vm281_vm1, %v1117_v25 }
 0x793   : > { %1538 = shalt.err (!%p1535_p9)
}
 0x794   : > { %s1539_s17 = scalar_lea.hbm %s1867_s28, 128  ;;  %s1543_s26 = scalar_lea.hbm %s1910_s5, 256 }
 0x795   : > { %p1540_p13 = scmp.ne.s32.totalorder %s1867_s28, %s1539_s17  ;;  %p1544_p4 = scmp.lt.s32.totalorder %s1867_s28, %s1910_s5 }
 0x796   : > { %p1545_p8 = scmp.lt.s32.totalorder %s1543_s26, %s1539_s17 }
 0x797   : > { %p1541_p5 = pnand %p1540_p13, %p1926_p0 }
 0x798   : > { %p1546_p3 = por %p1545_p8, %p1544_p4 }
 0x799   : > { %p1542_p10 = pneg %p1541_p5 }
 0x79b   : > { %p1547_p11 = pnand %p1546_p3, %p1542_p10 }
 0x79d   : > { %1550 = shalt.err (!%p1547_p11)
}
 0x79e   : > { %1354 = dma.vmem_to_hbm [thread:$0]  (%p1926_p0), %s1136_s30, 128, %s1867_s28, %s1122_s7  }
 0x79f PF: > { %s1147_s11 = sand.u32 1, %s1581_s18   ;;  %p1927_p1 = scmp.ne.s32.totalorder %s1916_s25, 0 }
 0x7a0   : > { %p1928_p2 = scmp.ge.s32.totalorder %s1593_s21, 2  ;;  %s1148_s12 = scalar_lea.sflag [#allocation4], %s1147_s11 }
 0x7a2   : > { %p1368_p6 = pnand %p1928_p2, %p1927_p1 }
 0x7a4   : > { %p1369_p12 = pneg %p1368_p6 }
 0x7a6   : > { %1576 = dma.done.wait (%p1369_p12), %s1148_s12, 128  }
 0x7a7   : > { %1578 = vsyncadd (%p1369_p12), %s1148_s12, 4294967168  ;;  %p19_p7 = scmp.ge.s32.totalorder %s1719_s15, 4   ;;  %s1929_s18 = smov %s1585_s19 }
 0x7a8   : > { %s1930_s19 = smov %s1589_s20  ;;  %s1931_s20 = smov %s1735_s27 }
 0x7a9   : > { %s1932_s21 = smov %s1719_s15  ;;  %21 = sbr.rel (!%p19_p7) target bundleno = 6 (0x6), region = 93 }
 0x7ae   :  { %1153 = vsyncpa [#allocation3], 1 }
 0x7af   :  { %1155 = vsyncpa [#allocation3 + $0x1], 1 }
 0x7b0   :  { %1156 = vsyncpa [#allocation6], 1 }
 0x7b1   :  { %1157 = vsyncpa [#allocation4], 1 }
 0x7b2   :  { %1159 = vsyncpa [#allocation4 + $0x1], 1 }

</bundles_post_ra>
